<compile_context>
chip_gen: v7x
topology: tpu7x:2x2x1
jax: 0.10.0
libtpu: 0.0.40
codegen_flags: <defaults>
</compile_context>

<pallas_src>
import functools

import jax
import jax.numpy as jnp
from jax.experimental import pallas as pl
from jax.experimental.pallas import tpu as pltpu

LANE = 128
SUBLANE = 8
CLAMP = 50.0


def _round_up(x, m):
    return ((x + m - 1) // m) * m


# ----------------------------- Pallas kernel ---------------------------------
def _recognition_head_kernel(
    xl_ref, xr_ref, xb_ref, xf_ref,          # activations, f32
    wl_ref, wr_ref, wb_ref, wf_ref,          # weights, bf16 (vocab pre-padded)
    bl_ref, br_ref, bb_ref, bf_ref,          # biases, f32 (vocab pre-padded)
    ol_ref, or_ref, ob_ref, of_ref,          # outputs, f32
):
    """All five RecognitionHead Linears + clamp(-50, 50) for one row tile.

    fuse_coord + alignment share the same input features, so wf_ref arrives
    pre-concatenated along N: (D, 2*Vp) -> of_ref is (tile_m, 2*Vp).
    """

    def head(x_ref, w_ref, b_ref, o_ref):
        # bf16 cast in-register (VPU filler); MXU accumulates in f32.
        x = x_ref[...].astype(jnp.bfloat16)
        y = jnp.dot(x, w_ref[...], preferred_element_type=jnp.float32)
        o_ref[...] = jnp.clip(y + b_ref[...], -CLAMP, CLAMP)

    head(xl_ref, wl_ref, bl_ref, ol_ref)
    head(xr_ref, wr_ref, br_ref, or_ref)
    head(xb_ref, wb_ref, bb_ref, ob_ref)
    head(xf_ref, wf_ref, bf_ref, of_ref)


# ------------------------------ fused wrapper ---------------------------------
def _fused_recognition_heads(xl, xr, xb, xf, packed, *, max_tile_m=256):
    """xl/xr/xb: (M, C) f32, xf: (M, D) f32 -> padded logits.

    Returns (left, right, body, fuse2) of shapes (Mp, Vp) x3 and (Mp, 2*Vp),
    f32, with the vocab dimension padded to a lane multiple.  Caller slices.
    """
    M, C = xl.shape
    D = xf.shape[-1]
    Vp = packed["w_left"].shape[-1]

    # Row tile: sublane aligned, capped for v5e scoped-VMEM headroom, and split
    # so a v7x megacore gets >= 2 parallel grid steps whenever possible.
    tile_m = min(max_tile_m, _round_up(M, SUBLANE))
    if tile_m > SUBLANE and pl.cdiv(M, tile_m) < 2:
        tile_m = _round_up(pl.cdiv(M, 2), SUBLANE)
    Mp = _round_up(M, tile_m)
    if Mp != M:  # only materialize a pad when the grid does not divide M
        pad = ((0, Mp - M), (0, 0))
        xl, xr, xb, xf = (jnp.pad(a, pad) for a in (xl, xr, xb, xf))

    grid = (Mp // tile_m,)

    cost = pl.CostEstimate(
        flops=2 * Mp * (3 * C + 2 * D) * Vp,
        transcendentals=0,
        bytes_accessed=(4 * Mp * (3 * C + D)                # f32 activations in
                        + 2 * (3 * C * Vp + 2 * D * Vp)     # bf16 weights
                        + 4 * 5 * Vp                        # f32 biases
                        + 4 * Mp * 5 * Vp),                 # f32 logits out
    )

    row_spec_c = pl.BlockSpec((tile_m, C), lambda i: (i, 0))
    row_spec_d = pl.BlockSpec((tile_m, D), lambda i: (i, 0))
    w_spec_c = pl.BlockSpec((C, Vp), lambda i: (0, 0))
    w_spec_d = pl.BlockSpec((D, 2 * Vp), lambda i: (0, 0))
    b_spec = pl.BlockSpec((1, Vp), lambda i: (0, 0))
    b_spec2 = pl.BlockSpec((1, 2 * Vp), lambda i: (0, 0))
    o_spec = pl.BlockSpec((tile_m, Vp), lambda i: (i, 0))
    o_spec2 = pl.BlockSpec((tile_m, 2 * Vp), lambda i: (i, 0))

    return pl.pallas_call(
        _recognition_head_kernel,
        out_shape=(
            jax.ShapeDtypeStruct((Mp, Vp), jnp.float32),
            jax.ShapeDtypeStruct((Mp, Vp), jnp.float32),
            jax.ShapeDtypeStruct((Mp, Vp), jnp.float32),
            jax.ShapeDtypeStruct((Mp, 2 * Vp), jnp.float32),
        ),
        grid=grid,
        in_specs=[row_spec_c, row_spec_c, row_spec_c, row_spec_d,
                  w_spec_c, w_spec_c, w_spec_c, w_spec_d,
                  b_spec, b_spec, b_spec, b_spec2],
        out_specs=(o_spec, o_spec, o_spec, o_spec2),
        compiler_params=pltpu.CompilerParams(
            dimension_semantics=("parallel",)),
        cost_estimate=cost,
    )(xl, xr, xb, xf,
      packed["w_left"], packed["w_right"], packed["w_body"], packed["w_fuse2"],
      packed["b_left"], packed["b_right"], packed["b_body"], packed["b_fuse2"])


# ----------------------------- parameter init --------------------------------
def xavier_uniform_t(key, fan_in, fan_out, dtype=jnp.float32):
    """Xavier-uniform init of a PyTorch (out,in) Linear weight, stored (in,out)."""
    limit = (6.0 / (fan_in + fan_out)) ** 0.5
    return jax.random.uniform(key, (fan_in, fan_out), dtype, -limit, limit)


def init_recognition_head(key, c_res, d_fuse, d_align, vocab):
    """Raw f32 parameters matching the PyTorch module (weights stored (in, out))."""
    k = jax.random.split(key, 5)
    zeros = lambda: jnp.zeros((1, vocab), jnp.float32)
    return {
        "left":       (xavier_uniform_t(k[0], c_res, vocab),   zeros()),
        "right":      (xavier_uniform_t(k[1], c_res, vocab),   zeros()),
        "body":       (xavier_uniform_t(k[2], c_res, vocab),   zeros()),
        "fuse_coord": (xavier_uniform_t(k[3], d_fuse, vocab),  zeros()),
        # TODO(synk): AlignmentModule's definition is not in the reference code;
        # it is modeled as a single Linear(d_align -> vocab) applied to the
        # time-major (T, B, D) fused features.
        "align":      (xavier_uniform_t(k[4], d_align, vocab), zeros()),
    }


def pack_recognition_head(raw):
    """One-time static weight prep (done at init, NOT per forward):
    pad vocab to a lane multiple, cast MXU operands to bf16, and concatenate
    fuse_coord + alignment weights along N (they read the same features)."""
    V = raw["left"][0].shape[-1]
    Vp = _round_up(V, LANE)
    if raw["fuse_coord"][0].shape[0] != raw["align"][0].shape[0]:
        raise ValueError("fuse_coord / alignment input dims must match for the N-fused matmul")

    def pad_w(w):
        return jnp.pad(w, ((0, 0), (0, Vp - V))).astype(jnp.bfloat16)

    def pad_b(b):
        return jnp.pad(b, ((0, 0), (0, Vp - V))).astype(jnp.float32)

    return {
        "w_left":  pad_w(raw["left"][0]),  "b_left":  pad_b(raw["left"][1]),
        "w_right": pad_w(raw["right"][0]), "b_right": pad_b(raw["right"][1]),
        "w_body":  pad_w(raw["body"][0]),  "b_body":  pad_b(raw["body"][1]),
        "w_fuse2": jnp.concatenate([pad_w(raw["fuse_coord"][0]), pad_w(raw["align"][0])], axis=-1),
        "b_fuse2": jnp.concatenate([pad_b(raw["fuse_coord"][1]), pad_b(raw["align"][1])], axis=-1),
    }


# ------------------------------ forward pass ---------------------------------
def recognition_head_forward(packed, left_output, right_output, fuse_output,
                             body_output, *, vocab):
    B, T, C = left_output.shape
    D = fuse_output.shape[-1]
    M = B * T
    Vp = packed["w_left"].shape[-1]

    out_l, out_r, out_b, out_f2 = _fused_recognition_heads(
        left_output.reshape(M, C),
        right_output.reshape(M, C),
        body_output.reshape(M, C),
        fuse_output.reshape(M, D),
        packed)

    left_logits = out_l[:M, :vocab].reshape(B, T, vocab)
    right_logits = out_r[:M, :vocab].reshape(B, T, vocab)
    body_logits = out_b[:M, :vocab].reshape(B, T, vocab)
    fuse_coord_logits = out_f2[:M, :vocab].reshape(B, T, vocab)
    # Row-wise Linear commutes with the (B,T)->(T,B) permute, so only the
    # small (B,T,V) alignment logits are transposed, not the fused features.
    align_logits = jnp.transpose(
        out_f2[:M, Vp:Vp + vocab].reshape(B, T, vocab), (1, 0, 2))

    return {
        "alignment_gloss_logits": align_logits,        # (T, B, V)
        "left": left_logits,                           # (B, T, V)
        "right": right_logits,                         # (B, T, V)
        "body": body_logits,                           # (B, T, V)
        "fuse_coord_gloss_logits": fuse_coord_logits,  # (B, T, V)
    }


# ---------------------------------- main --------------------------------------
if __name__ == "__main__":
    B, T = 2, 8
    C_RES = 32       # cfg['residual_blocks'][-1]
    D_FUSE = 64      # cfg['out_fusion_dim']
    D_ALIGN = 64     # alignment module input dim (fuse feature dim)
    VOCAB = 40       # len(gloss_tokenizer)

    root = jax.random.PRNGKey(0)
    kp, k1, k2, k3, k4 = jax.random.split(root, 5)

    raw_params = init_recognition_head(kp, C_RES, D_FUSE, D_ALIGN, VOCAB)
    packed_params = pack_recognition_head(raw_params)   # one-time weight prep

    left_output = jax.random.normal(k1, (B, T, C_RES), jnp.float32)
    right_output = jax.random.normal(k2, (B, T, C_RES), jnp.float32)
    fuse_output = jax.random.normal(k3, (B, T, D_FUSE), jnp.float32)
    body_output = jax.random.normal(k4, (B, T, C_RES), jnp.float32)

    fwd = jax.jit(functools.partial(recognition_head_forward, vocab=VOCAB))
    outputs = fwd(packed_params, left_output, right_output, fuse_output, body_output)
    outputs = jax.tree_util.tree_map(jax.block_until_ready, outputs)

    # shape / clamp sanity checks
    assert outputs["left"].shape == (B, T, VOCAB)
    assert outputs["right"].shape == (B, T, VOCAB)
    assert outputs["body"].shape == (B, T, VOCAB)
    assert outputs["fuse_coord_gloss_logits"].shape == (B, T, VOCAB)
    assert outputs["alignment_gloss_logits"].shape == (T, B, VOCAB)
    for v in outputs.values():
        assert bool(jnp.all(v <= 50.0)) and bool(jnp.all(v >= -50.0))

    # numeric check vs. a pure-JAX f32 reference (bf16 MXU operands -> loose tol)
    def ref_head(x, w, b):
        return jnp.clip(x @ w + b, -50.0, 50.0)

    ref = {
        "left": ref_head(left_output, *raw_params["left"]),
        "right": ref_head(right_output, *raw_params["right"]),
        "body": ref_head(body_output, *raw_params["body"]),
        "fuse_coord_gloss_logits": ref_head(fuse_output, *raw_params["fuse_coord"]),
        "alignment_gloss_logits": ref_head(jnp.transpose(fuse_output, (1, 0, 2)),
                                           *raw_params["align"]),
    }
    for name, r in ref.items():
        assert bool(jnp.allclose(outputs[name], r, atol=0.25)), name

    print("KERNEL_OK")
</pallas_src>

<mosaic_0001>
module attributes {stable_mosaic.version = 11 : i64} {
  func.func @_recognition_head_kernel(%arg0: i32, %arg1: memref<8x32xf32, #tpu.memory_space<vmem>>, %arg2: memref<8x32xf32, #tpu.memory_space<vmem>>, %arg3: memref<8x32xf32, #tpu.memory_space<vmem>>, %arg4: memref<8x64xf32, #tpu.memory_space<vmem>>, %arg5: memref<32x128xbf16, #tpu.memory_space<vmem>>, %arg6: memref<32x128xbf16, #tpu.memory_space<vmem>>, %arg7: memref<32x128xbf16, #tpu.memory_space<vmem>>, %arg8: memref<64x256xbf16, #tpu.memory_space<vmem>>, %arg9: memref<1x128xf32, #tpu.memory_space<vmem>>, %arg10: memref<1x128xf32, #tpu.memory_space<vmem>>, %arg11: memref<1x128xf32, #tpu.memory_space<vmem>>, %arg12: memref<1x256xf32, #tpu.memory_space<vmem>>, %arg13: memref<8x128xf32, #tpu.memory_space<vmem>>, %arg14: memref<8x128xf32, #tpu.memory_space<vmem>>, %arg15: memref<8x128xf32, #tpu.memory_space<vmem>>, %arg16: memref<8x256xf32, #tpu.memory_space<vmem>>) attributes {dimension_semantics = [#tpu.dimension_semantics<parallel>], iteration_bounds = array<i64: 2>, scalar_prefetch = 0 : i64, scratch_operands = 0 : i64, tpu.core_type = #tpu.core_type<tc>, window_params = [{transform_indices = @transform_0, window_bounds = array<i64: 8, 32>}, {transform_indices = @transform_1, window_bounds = array<i64: 8, 32>}, {transform_indices = @transform_2, window_bounds = array<i64: 8, 32>}, {transform_indices = @transform_3, window_bounds = array<i64: 8, 64>}, {pipeline_mode = #tpu.pipeline_mode<synchronous>, transform_indices = @transform_4, window_bounds = array<i64: 32, 128>}, {pipeline_mode = #tpu.pipeline_mode<synchronous>, transform_indices = @transform_5, window_bounds = array<i64: 32, 128>}, {pipeline_mode = #tpu.pipeline_mode<synchronous>, transform_indices = @transform_6, window_bounds = array<i64: 32, 128>}, {pipeline_mode = #tpu.pipeline_mode<synchronous>, transform_indices = @transform_7, window_bounds = array<i64: 64, 256>}, {pipeline_mode = #tpu.pipeline_mode<synchronous>, transform_indices = @transform_8, window_bounds = array<i64: 1, 128>}, {pipeline_mode = #tpu.pipeline_mode<synchronous>, transform_indices = @transform_9, window_bounds = array<i64: 1, 128>}, {pipeline_mode = #tpu.pipeline_mode<synchronous>, transform_indices = @transform_10, window_bounds = array<i64: 1, 128>}, {pipeline_mode = #tpu.pipeline_mode<synchronous>, transform_indices = @transform_11, window_bounds = array<i64: 1, 256>}, {transform_indices = @transform_12, window_bounds = array<i64: 8, 128>}, {transform_indices = @transform_13, window_bounds = array<i64: 8, 128>}, {transform_indices = @transform_14, window_bounds = array<i64: 8, 128>}, {transform_indices = @transform_15, window_bounds = array<i64: 8, 256>}]} {
    %c0 = arith.constant 0 : index
    %c0_0 = arith.constant 0 : index
    %0 = vector.load %arg1[%c0, %c0_0] : memref<8x32xf32, #tpu.memory_space<vmem>>, vector<8x32xf32>
    %1 = arith.truncf %0 : vector<8x32xf32> to vector<8x32xbf16>
    %c0_1 = arith.constant 0 : index
    %c0_2 = arith.constant 0 : index
    %2 = vector.load %arg5[%c0_1, %c0_2] : memref<32x128xbf16, #tpu.memory_space<vmem>>, vector<32x128xbf16>
    %cst = arith.constant dense<0.000000e+00> : vector<8x128xf32>
    %3 = tpu.matmul %1, %2, %cst {dimension_numbers = #tpu.dot_dimension_numbers<[1], [0], [0], [1], [0, 0, 1, 1], [], []>} : vector<8x32xbf16>, vector<32x128xbf16>, vector<8x128xf32> -> vector<8x128xf32>
    %c0_3 = arith.constant 0 : index
    %c0_4 = arith.constant 0 : index
    %4 = vector.load %arg9[%c0_3, %c0_4] : memref<1x128xf32, #tpu.memory_space<vmem>>, vector<1x128xf32>
    %5 = vector.broadcast %4 : vector<1x128xf32> to vector<8x128xf32>
    %6 = arith.addf %3, %5 : vector<8x128xf32>
    %cst_5 = arith.constant -5.000000e+01 : f32
    %cst_6 = arith.constant 5.000000e+01 : f32
    %7 = vector.broadcast %cst_5 : f32 to vector<8x128xf32>
    %8 = arith.maximumf %7, %6 : vector<8x128xf32>
    %9 = vector.broadcast %cst_6 : f32 to vector<8x128xf32>
    %10 = arith.minimumf %9, %8 : vector<8x128xf32>
    %c0_7 = arith.constant 0 : index
    %c0_8 = arith.constant 0 : index
    %11 = vector.load %arg13[%c0_7, %c0_8] : memref<8x128xf32, #tpu.memory_space<vmem>>, vector<8x128xf32>
    tpu.vector_store %arg13[%c0_7, %c0_8], %10 {strides = array<i32>} : memref<8x128xf32, #tpu.memory_space<vmem>>, vector<8x128xf32>,
    %c0_9 = arith.constant 0 : index
    %c0_10 = arith.constant 0 : index
    %12 = vector.load %arg2[%c0_9, %c0_10] : memref<8x32xf32, #tpu.memory_space<vmem>>, vector<8x32xf32>
    %13 = arith.truncf %12 : vector<8x32xf32> to vector<8x32xbf16>
    %c0_11 = arith.constant 0 : index
    %c0_12 = arith.constant 0 : index
    %14 = vector.load %arg6[%c0_11, %c0_12] : memref<32x128xbf16, #tpu.memory_space<vmem>>, vector<32x128xbf16>
    %cst_13 = arith.constant dense<0.000000e+00> : vector<8x128xf32>
    %15 = tpu.matmul %13, %14, %cst_13 {dimension_numbers = #tpu.dot_dimension_numbers<[1], [0], [0], [1], [0, 0, 1, 1], [], []>} : vector<8x32xbf16>, vector<32x128xbf16>, vector<8x128xf32> -> vector<8x128xf32>
    %c0_14 = arith.constant 0 : index
    %c0_15 = arith.constant 0 : index
    %16 = vector.load %arg10[%c0_14, %c0_15] : memref<1x128xf32, #tpu.memory_space<vmem>>, vector<1x128xf32>
    %17 = vector.broadcast %16 : vector<1x128xf32> to vector<8x128xf32>
    %18 = arith.addf %15, %17 : vector<8x128xf32>
    %cst_16 = arith.constant -5.000000e+01 : f32
    %cst_17 = arith.constant 5.000000e+01 : f32
    %19 = vector.broadcast %cst_16 : f32 to vector<8x128xf32>
    %20 = arith.maximumf %19, %18 : vector<8x128xf32>
    %21 = vector.broadcast %cst_17 : f32 to vector<8x128xf32>
    %22 = arith.minimumf %21, %20 : vector<8x128xf32>
    %c0_18 = arith.constant 0 : index
    %c0_19 = arith.constant 0 : index
    %23 = vector.load %arg14[%c0_18, %c0_19] : memref<8x128xf32, #tpu.memory_space<vmem>>, vector<8x128xf32>
    tpu.vector_store %arg14[%c0_18, %c0_19], %22 {strides = array<i32>} : memref<8x128xf32, #tpu.memory_space<vmem>>, vector<8x128xf32>,
    %c0_20 = arith.constant 0 : index
    %c0_21 = arith.constant 0 : index
    %24 = vector.load %arg3[%c0_20, %c0_21] : memref<8x32xf32, #tpu.memory_space<vmem>>, vector<8x32xf32>
    %25 = arith.truncf %24 : vector<8x32xf32> to vector<8x32xbf16>
    %c0_22 = arith.constant 0 : index
    %c0_23 = arith.constant 0 : index
    %26 = vector.load %arg7[%c0_22, %c0_23] : memref<32x128xbf16, #tpu.memory_space<vmem>>, vector<32x128xbf16>
    %cst_24 = arith.constant dense<0.000000e+00> : vector<8x128xf32>
    %27 = tpu.matmul %25, %26, %cst_24 {dimension_numbers = #tpu.dot_dimension_numbers<[1], [0], [0], [1], [0, 0, 1, 1], [], []>} : vector<8x32xbf16>, vector<32x128xbf16>, vector<8x128xf32> -> vector<8x128xf32>
    %c0_25 = arith.constant 0 : index
    %c0_26 = arith.constant 0 : index
    %28 = vector.load %arg11[%c0_25, %c0_26] : memref<1x128xf32, #tpu.memory_space<vmem>>, vector<1x128xf32>
    %29 = vector.broadcast %28 : vector<1x128xf32> to vector<8x128xf32>
    %30 = arith.addf %27, %29 : vector<8x128xf32>
    %cst_27 = arith.constant -5.000000e+01 : f32
    %cst_28 = arith.constant 5.000000e+01 : f32
    %31 = vector.broadcast %cst_27 : f32 to vector<8x128xf32>
    %32 = arith.maximumf %31, %30 : vector<8x128xf32>
    %33 = vector.broadcast %cst_28 : f32 to vector<8x128xf32>
    %34 = arith.minimumf %33, %32 : vector<8x128xf32>
    %c0_29 = arith.constant 0 : index
    %c0_30 = arith.constant 0 : index
    %35 = vector.load %arg15[%c0_29, %c0_30] : memref<8x128xf32, #tpu.memory_space<vmem>>, vector<8x128xf32>
    tpu.vector_store %arg15[%c0_29, %c0_30], %34 {strides = array<i32>} : memref<8x128xf32, #tpu.memory_space<vmem>>, vector<8x128xf32>,
    %c0_31 = arith.constant 0 : index
    %c0_32 = arith.constant 0 : index
    %36 = vector.load %arg4[%c0_31, %c0_32] : memref<8x64xf32, #tpu.memory_space<vmem>>, vector<8x64xf32>
    %37 = arith.truncf %36 : vector<8x64xf32> to vector<8x64xbf16>
    %c0_33 = arith.constant 0 : index
    %c0_34 = arith.constant 0 : index
    %38 = vector.load %arg8[%c0_33, %c0_34] : memref<64x256xbf16, #tpu.memory_space<vmem>>, vector<64x256xbf16>
    %cst_35 = arith.constant dense<0.000000e+00> : vector<8x256xf32>
    %39 = tpu.matmul %37, %38, %cst_35 {dimension_numbers = #tpu.dot_dimension_numbers<[1], [0], [0], [1], [0, 0, 1, 1], [], []>} : vector<8x64xbf16>, vector<64x256xbf16>, vector<8x256xf32> -> vector<8x256xf32>
    %c0_36 = arith.constant 0 : index
    %c0_37 = arith.constant 0 : index
    %40 = vector.load %arg12[%c0_36, %c0_37] : memref<1x256xf32, #tpu.memory_space<vmem>>, vector<1x256xf32>
    %41 = vector.broadcast %40 : vector<1x256xf32> to vector<8x256xf32>
    %42 = arith.addf %39, %41 : vector<8x256xf32>
    %cst_38 = arith.constant -5.000000e+01 : f32
    %cst_39 = arith.constant 5.000000e+01 : f32
    %43 = vector.broadcast %cst_38 : f32 to vector<8x256xf32>
    %44 = arith.maximumf %43, %42 : vector<8x256xf32>
    %45 = vector.broadcast %cst_39 : f32 to vector<8x256xf32>
    %46 = arith.minimumf %45, %44 : vector<8x256xf32>
    %c0_40 = arith.constant 0 : index
    %c0_41 = arith.constant 0 : index
    %47 = vector.load %arg16[%c0_40, %c0_41] : memref<8x256xf32, #tpu.memory_space<vmem>>, vector<8x256xf32>
    tpu.vector_store %arg16[%c0_40, %c0_41], %46 {strides = array<i32>} : memref<8x256xf32, #tpu.memory_space<vmem>>, vector<8x256xf32>,
    return
  }
  func.func @transform_0(%arg0: i32) -> (i32, i32) {
    %c0_i32 = arith.constant 0 : i32
    %c0_i32_0 = arith.constant 0 : i32
    return %arg0, %c0_i32 : i32, i32
  }
  func.func @transform_1(%arg0: i32) -> (i32, i32) {
    %c0_i32 = arith.constant 0 : i32
    %c0_i32_0 = arith.constant 0 : i32
    return %arg0, %c0_i32 : i32, i32
  }
  func.func @transform_2(%arg0: i32) -> (i32, i32) {
    %c0_i32 = arith.constant 0 : i32
    %c0_i32_0 = arith.constant 0 : i32
    return %arg0, %c0_i32 : i32, i32
  }
  func.func @transform_3(%arg0: i32) -> (i32, i32) {
    %c0_i32 = arith.constant 0 : i32
    %c0_i32_0 = arith.constant 0 : i32
    return %arg0, %c0_i32 : i32, i32
  }
  func.func @transform_4(%arg0: i32) -> (i32, i32) {
    %c0_i32 = arith.constant 0 : i32
    %c0_i32_0 = arith.constant 0 : i32
    %c0_i32_1 = arith.constant 0 : i32
    return %c0_i32, %c0_i32_0 : i32, i32
  }
  func.func @transform_5(%arg0: i32) -> (i32, i32) {
    %c0_i32 = arith.constant 0 : i32
    %c0_i32_0 = arith.constant 0 : i32
    %c0_i32_1 = arith.constant 0 : i32
    return %c0_i32, %c0_i32_0 : i32, i32
  }
  func.func @transform_6(%arg0: i32) -> (i32, i32) {
    %c0_i32 = arith.constant 0 : i32
    %c0_i32_0 = arith.constant 0 : i32
    %c0_i32_1 = arith.constant 0 : i32
    return %c0_i32, %c0_i32_0 : i32, i32
  }
  func.func @transform_7(%arg0: i32) -> (i32, i32) {
    %c0_i32 = arith.constant 0 : i32
    %c0_i32_0 = arith.constant 0 : i32
    %c0_i32_1 = arith.constant 0 : i32
    return %c0_i32, %c0_i32_0 : i32, i32
  }
  func.func @transform_8(%arg0: i32) -> (i32, i32) {
    %c0_i32 = arith.constant 0 : i32
    %c0_i32_0 = arith.constant 0 : i32
    %c0_i32_1 = arith.constant 0 : i32
    return %c0_i32, %c0_i32_0 : i32, i32
  }
  func.func @transform_9(%arg0: i32) -> (i32, i32) {
    %c0_i32 = arith.constant 0 : i32
    %c0_i32_0 = arith.constant 0 : i32
    %c0_i32_1 = arith.constant 0 : i32
    return %c0_i32, %c0_i32_0 : i32, i32
  }
  func.func @transform_10(%arg0: i32) -> (i32, i32) {
    %c0_i32 = arith.constant 0 : i32
    %c0_i32_0 = arith.constant 0 : i32
    %c0_i32_1 = arith.constant 0 : i32
    return %c0_i32, %c0_i32_0 : i32, i32
  }
  func.func @transform_11(%arg0: i32) -> (i32, i32) {
    %c0_i32 = arith.constant 0 : i32
    %c0_i32_0 = arith.constant 0 : i32
    %c0_i32_1 = arith.constant 0 : i32
    return %c0_i32, %c0_i32_0 : i32, i32
  }
  func.func @transform_12(%arg0: i32) -> (i32, i32) {
    %c0_i32 = arith.constant 0 : i32
    %c0_i32_0 = arith.constant 0 : i32
    return %arg0, %c0_i32 : i32, i32
  }
  func.func @transform_13(%arg0: i32) -> (i32, i32) {
    %c0_i32 = arith.constant 0 : i32
    %c0_i32_0 = arith.constant 0 : i32
    return %arg0, %c0_i32 : i32, i32
  }
  func.func @transform_14(%arg0: i32) -> (i32, i32) {
    %c0_i32 = arith.constant 0 : i32
    %c0_i32_0 = arith.constant 0 : i32
    return %arg0, %c0_i32 : i32, i32
  }
  func.func @transform_15(%arg0: i32) -> (i32, i32) {
    %c0_i32 = arith.constant 0 : i32
    %c0_i32_0 = arith.constant 0 : i32
    return %arg0, %c0_i32 : i32, i32
  }
}

</mosaic_0001>

<bundles_post_ra>
// kernel: recognition_head_forward.1
= control target key start
LH: loop header
LB: loop body
LE: loop exit
PB: predicated region body
PF: predicated region fallthrough
CT: control target
= control target key end

     0   :  { %s2225_s0 = inlined_call_operand.vmem [shape: f32[16,32], index: 0, kind: input, shape index: {}]   ;;  %s2226_s1 = inlined_call_operand.vmem [shape: f32[16,32], index: 1, kind: input, shape index: {}]   ;;  %s2227_s2 = inlined_call_operand.vmem [shape: f32[16,32], index: 2, kind: input, shape index: {}]   ;;  %s2228_s3 = inlined_call_operand.hbm [shape: f32[16,64], index: 3, kind: input, shape index: {}]   ;;  %s2229_s4 = inlined_call_operand.hbm [shape: bf16[32,128], index: 4, kind: input, shape index: {}]   ;;  %s2230_s5 = inlined_call_operand.hbm [shape: bf16[32,128], index: 5, kind: input, shape index: {}]   ;;  %s2231_s6 = inlined_call_operand.hbm [shape: bf16[32,128], index: 6, kind: input, shape index: {}]   ;;  %s2232_s7 = inlined_call_operand.hbm [shape: bf16[64,256], index: 7, kind: input, shape index: {}]   ;;  %s2233_s8 = inlined_call_operand.vmem [shape: f32[1,128], index: 8, kind: input, shape index: {}]   ;;  %s2234_s9 = inlined_call_operand.hbm [shape: f32[1,128], index: 9, kind: input, shape index: {}]   ;;  %s2235_s10 = inlined_call_operand.hbm [shape: f32[1,128], index: 10, kind: input, shape index: {}]   ;;  %s2236_s11 = inlined_call_operand.hbm [shape: f32[1,256], index: 11, kind: input, shape index: {}]   ;;  %s2237_s12 = inlined_call_operand.vmem [shape: f32[16,128], index: 12, kind: output, shape index: {0}]   ;;  %s2238_s13 = inlined_call_operand.vmem [shape: f32[16,128], index: 13, kind: output, shape index: {1}]   ;;  %s2239_s14 = inlined_call_operand.vmem [shape: f32[16,128], index: 14, kind: output, shape index: {2}]   ;;  %s2240_s15 = inlined_call_operand.vmem [shape: f32[16,256], index: 15, kind: output, shape index: {3}]  }
   0x1   :  { %2244 = sst [smem:[#allocation20_spill]] %s2225_s0 }
   0x2   :  { %2245 = sst [smem:[#allocation21_spill]] %s2227_s2 }
   0x3   :  { %2246 = sst [smem:[#allocation22_spill]] %s2229_s4 }
   0x4   :  { %2247 = sst [smem:[#allocation23_spill]] %s2230_s5 }
   0x5   :  { %2248 = sst [smem:[#allocation24_spill]] %s2233_s8 }
   0x6   :  { %2249 = sst [smem:[#allocation25_spill]] %s2237_s12 }
   0x7   :  { %2250 = sst [smem:[#allocation26_spill]] %s2238_s13 }
   0x8   :  { %2251 = sst [smem:[#allocation27_spill]] %s2239_s14 }
   0x9   :  { %2252 = sst [smem:[#allocation28_spill]] %s2240_s15 }
   0xa   :  { %21 = vsyncpa [#allocation3], 0 }
   0xb   :  { %23 = vsyncpa [#allocation3 + $0x1], 0 }
   0xc   :  { %24 = vsyncpa [#allocation5], 0 }
   0xd   :  { %25 = vsyncpa [#allocation8], 0 }
   0xe   :  { %26 = vsyncpa [#allocation11], 0 }
   0xf   :  { %27 = vsyncpa [#allocation14], 0  ;;  %s1880_s18 = smov 0   ;;  %s1882_s19 = smov 0  }
  0x10   :  { %s1884_s20 = smov 0   ;;  %s1886_s21 = smov 0  }
  0x11 LB: > { %s1785_s22 = smov [#allocation4]   ;;  %s1901_s24 = sadd.s32 4294967295, %s1783_s21   ;;  %s1783_s21 = sphi %s1886_s21, %s2281_s21   ;;  %s1779_s20 = sphi %s1884_s20, %s2280_s20   ;;  %s1775_s19 = sphi %s1882_s19, %s2279_s19   ;;  %s1771_s18 = sphi %s1880_s18, %s2278_s18  }
  0x12   : > { %s426_s23 = sshll.u32 %s1785_s22, 4  ;;  %p1282_p0 = scmp.ge.s32.totalorder %s1783_s21, 1  ;;  %s1906_s23 = int_to_ptr.vmem [resolvable:$true] %s426_s23 }
  0x13   : > { %p2242_p1 = scmp.eq.s32.totalorder %s1901_s24, 0  ;;  %p414_p2 = scmp.lt.s32.totalorder %s1783_s21, 3 }
  0x14   : > { %s1786_s26 = smov [#allocation7]   ;;  %s1787_s29 = smov [#allocation10]  }
  0x15   : > { %p1908_p3 = pnand %p1282_p0, %p414_p2  ;;  %s452_s27 = sshll.u32 %s1786_s26, 4  ;;  %s1920_s27 = int_to_ptr.vmem [resolvable:$true] %s452_s27 }
  0x16   : > { %s482_s30 = sshll.u32 %s1787_s29, 4  ;;  %s2255_s4 = sld [smem:[#allocation22_spill]]  ;;  %s1922_s30 = int_to_ptr.vmem [resolvable:$true] %s482_s30 }
  0x17   : > { %s2253_s25 = scalar_select %p1908_p3, 1, 0 }
  0x18   : > { %p1402_p4 = pneg %p1908_p3 }
  0x1a   : > { %p1916_p5 = pnand %p1402_p4, %p2242_p1 }
  0x1c   : > { %s1507_s22 = scalar_lea.hbm %s2255_s4, 256  ;;  %p1932_p7 = pneg %p1916_p5 }
  0x1d   : > { %p1508_p6 = scmp.ne.s32.totalorder %s2255_s4, %s1507_s22  ;;  %p1514_p10 = scmp.lt.u32.totalorder %s1507_s22, %s2255_s4 }
  0x1f   : > { %p1510_p8 = pnand %p1932_p7, %p1508_p6 }
  0x21   : > { %p1511_p9 = pneg %p1510_p8 }
  0x23   : > { %p1516_p11 = pnand %p1514_p10, %p1511_p9 }
  0x25   : > { %1519 = shalt.err (!%p1516_p11)
}
  0x26   : > { %s1520_s14 = scalar_lea.vmem %s1906_s23, 256  ;;  %p1528_p2 = scmp.lt.s32.totalorder %s1906_s23, %s1906_s23 }
  0x27   : > { %p1521_p12 = scmp.ne.s32.totalorder %s1906_s23, %s1520_s14  ;;  %p1529_p4 = scmp.lt.s32.totalorder %s1520_s14, %s1520_s14 }
  0x29   : > { %p1523_p13 = pnand %p1521_p12, %p1932_p7  ;;  %p1530_p6 = por %p1529_p4, %p1528_p2 }
  0x2b   : > { %p1524_p0 = pneg %p1523_p13 }
  0x2d   : > { %p1531_p8 = pnand %p1530_p6, %p1524_p0 }
  0x2f   : > { %1534 = shalt.err (!%p1531_p8)
}
  0x30   : > { %s2241_s15 = smov 64   ;;  %s1789_s12 = smov 4  }
  0x31   : > { %1405 = dma.hbm_to_vmem [thread:$0]  (!%p1916_p5), %s2255_s4, 256, %s1906_s23, [#allocation5], %s2241_s15, %s2241_s15, %s1789_s12  }
  0x32   : > { %s1535_s14 = scalar_lea.hbm %s2231_s6, 256 }
  0x33   : > { %p1536_p9 = scmp.ne.s32.totalorder %s2231_s6, %s1535_s14  ;;  %p1542_p12 = scmp.lt.u32.totalorder %s1535_s14, %s2231_s6 }
  0x35   : > { %p1538_p10 = pnand %p1536_p9, %p1932_p7 }
  0x37   : > { %p1539_p11 = pneg %p1538_p10 }
  0x39   : > { %p1544_p13 = pnand %p1542_p12, %p1539_p11 }
  0x3b   : > { %1547 = shalt.err (!%p1544_p13)
}
  0x3c   : > { %s1548_s23 = scalar_lea.vmem %s1920_s27, 256  ;;  %p1556_p6 = scmp.lt.s32.totalorder %s1920_s27, %s1920_s27 }
  0x3d   : > { %p1549_p0 = scmp.ne.s32.totalorder %s1920_s27, %s1548_s23  ;;  %p1557_p8 = scmp.lt.s32.totalorder %s1548_s23, %s1548_s23 }
  0x3f   : > { %p1551_p2 = pnand %p1549_p0, %p1932_p7  ;;  %p1558_p9 = por %p1557_p8, %p1556_p6 }
  0x41   : > { %p1552_p4 = pneg %p1551_p2 }
  0x43   : > { %p1559_p10 = pnand %p1558_p9, %p1552_p4 }
  0x45   : > { %1562 = shalt.err (!%p1559_p10)
}
  0x46   : > { %1411 = dma.hbm_to_vmem [thread:$0]  (!%p1916_p5), %s2231_s6, 256, %s1920_s27, [#allocation8], %s2241_s15, %s2241_s15, %s1789_s12  }
  0x47   : > { %s1563_s16 = scalar_lea.hbm %s2234_s9, 16 }
  0x48   : > { %p1564_p11 = scmp.ne.s32.totalorder %s2234_s9, %s1563_s16  ;;  %p1570_p0 = scmp.lt.u32.totalorder %s1563_s16, %s2234_s9 }
  0x4a   : > { %p1566_p12 = pnand %p1564_p11, %p1932_p7 }
  0x4c   : > { %p1567_p13 = pneg %p1566_p12 }
  0x4e   : > { %p1572_p2 = pnand %p1570_p0, %p1567_p13 }
  0x50   : > { %1575 = shalt.err (!%p1572_p2)
}
  0x51   : > { %s1576_s27 = scalar_lea.vmem %s1922_s30, 16  ;;  %s1583_s23 = scalar_lea.vmem %s1922_s30, 32 }
  0x52   : > { %p1577_p4 = scmp.ne.s32.totalorder %s1922_s30, %s1576_s27  ;;  %p1584_p9 = scmp.lt.s32.totalorder %s1922_s30, %s1922_s30 }
  0x53   : > { %p1585_p10 = scmp.lt.s32.totalorder %s1583_s23, %s1576_s27 }
  0x54   : > { %p1579_p6 = pnand %p1577_p4, %p1932_p7 }
  0x55   : > { %p1586_p11 = por %p1585_p10, %p1584_p9 }
  0x56   : > { %p1580_p8 = pneg %p1579_p6 }
  0x58   : > { %p1587_p12 = pnand %p1586_p11, %p1580_p8 }
  0x5a   : > { %1590 = shalt.err (!%p1587_p12)
}
  0x5b   : > { %1417 = dma.hbm_to_vmem [thread:$0]  (!%p1916_p5), %s2234_s9, 16, %s1922_s30, [#allocation11]  }
  0x5c   : > { %s1790_s8 = smov [#allocation6]   ;;  %s1791_s16 = smov [#allocation9]  }
  0x5d   : > { %s439_s13 = sshll.u32 %s1790_s8, 4  ;;  %s465_s17 = sshll.u32 %s1791_s16, 4  ;;  %s440_s13 = int_to_ptr.vmem [resolvable:$true] %s439_s13  ;;  %s466_s17 = int_to_ptr.vmem [resolvable:$true] %s465_s17 }
  0x5e   : > { %s2257_s5 = sld [smem:[#allocation23_spill]] }
  0x64   : > { %s1591_s14 = scalar_lea.hbm %s2257_s5, 256 }
  0x65   : > { %p1592_p13 = scmp.ne.s32.totalorder %s2257_s5, %s1591_s14  ;;  %p1598_p4 = scmp.lt.u32.totalorder %s1591_s14, %s2257_s5 }
  0x67   : > { %p1594_p0 = pnand %p1592_p13, %p1932_p7 }
  0x69   : > { %p1595_p2 = pneg %p1594_p0 }
  0x6b   : > { %p1600_p6 = pnand %p1598_p4, %p1595_p2 }
  0x6d   : > { %1603 = shalt.err (!%p1600_p6)
}
  0x6e   : > { %s1604_s30 = scalar_lea.vmem %s440_s13, 256  ;;  %p1612_p11 = scmp.lt.s32.totalorder %s440_s13, %s440_s13 }
  0x6f   : > { %p1605_p8 = scmp.ne.s32.totalorder %s440_s13, %s1604_s30  ;;  %p1613_p12 = scmp.lt.s32.totalorder %s1604_s30, %s1604_s30 }
  0x71   : > { %p1607_p9 = pnand %p1605_p8, %p1932_p7  ;;  %p1614_p1 = por %p1613_p12, %p1612_p11 }
  0x73   : > { %p1608_p10 = pneg %p1607_p9 }
  0x75   : > { %p1615_p3 = pnand %p1614_p1, %p1608_p10 }
  0x77   : > { %1618 = shalt.err (!%p1615_p3)
}
  0x78   : > { %s2258_s2 = smov 64   ;;  %s1619_s29 = scalar_lea.hbm %s2232_s7, 1024 }
  0x79   : > { %1408 = dma.hbm_to_vmem [thread:$0]  (!%p1916_p5), %s2257_s5, 256, %s440_s13, [#allocation5], %s2258_s2, %s2258_s2, %s1789_s12  }
  0x7a   : > { %p1620_p1 = scmp.ne.s32.totalorder %s2232_s7, %s1619_s29  ;;  %p1626_p0 = scmp.lt.u32.totalorder %s1619_s29, %s2232_s7 }
  0x7c   : > { %p1622_p3 = pnand %p1620_p1, %p1932_p7 }
  0x7e   : > { %p1623_p13 = pneg %p1622_p3 }
  0x80   : > { %p1628_p2 = pnand %p1626_p0, %p1623_p13 }
  0x82   : > { %1631 = shalt.err (!%p1628_p2)
}
  0x83   : > { %s1632_s30 = scalar_lea.vmem %s466_s17, 1024  ;;  %p1640_p9 = scmp.lt.s32.totalorder %s466_s17, %s466_s17 }
  0x84   : > { %p1633_p4 = scmp.ne.s32.totalorder %s466_s17, %s1632_s30  ;;  %p1641_p10 = scmp.lt.s32.totalorder %s1632_s30, %s1632_s30 }
  0x86   : > { %p1635_p6 = pnand %p1633_p4, %p1932_p7  ;;  %p1642_p11 = por %p1641_p10, %p1640_p9 }
  0x88   : > { %p1636_p8 = pneg %p1635_p6 }
  0x8a   : > { %p1643_p12 = pnand %p1642_p11, %p1636_p8 }
  0x8c   : > { %1646 = shalt.err (!%p1643_p12)
}
  0x8d   : > { %s1792_s12 = smov 128   ;;  %s1793_s13 = smov 8  }
  0x8e   : > { %1414 = dma.hbm_to_vmem [thread:$0]  (!%p1916_p5), %s2232_s7, 1024, %s466_s17, [#allocation8], %s1792_s12, %s1792_s12, %s1793_s13  }
  0x8f   : > { %s1794_s8 = smov [#allocation12]   ;;  %s1795_s22 = smov [#allocation13]  }
  0x90   : > { %s493_s16 = sshll.u32 %s1794_s8, 4  ;;  %s504_s29 = sshll.u32 %s1795_s22, 4  ;;  %s494_s16 = int_to_ptr.vmem [resolvable:$true] %s493_s16  ;;  %s505_s29 = int_to_ptr.vmem [resolvable:$true] %s504_s29 }
  0x91   : > { %s1647_s23 = scalar_lea.hbm %s2235_s10, 16 }
  0x92   : > { %p1648_p1 = scmp.ne.s32.totalorder %s2235_s10, %s1647_s23  ;;  %p1654_p0 = scmp.lt.u32.totalorder %s1647_s23, %s2235_s10 }
  0x94   : > { %p1650_p3 = pnand %p1648_p1, %p1932_p7 }
  0x96   : > { %p1651_p13 = pneg %p1650_p3 }
  0x98   : > { %p1656_p2 = pnand %p1654_p0, %p1651_p13 }
  0x9a   : > { %1659 = shalt.err (!%p1656_p2)
}
  0x9b   : > { %s1660_s17 = scalar_lea.vmem %s494_s16, 16  ;;  %s1667_s12 = scalar_lea.vmem %s494_s16, 32 }
  0x9c   : > { %p1661_p4 = scmp.ne.s32.totalorder %s494_s16, %s1660_s17  ;;  %p1668_p9 = scmp.lt.s32.totalorder %s494_s16, %s494_s16 }
  0x9d   : > { %p1669_p10 = scmp.lt.s32.totalorder %s1667_s12, %s1660_s17 }
  0x9e   : > { %p1663_p6 = pnand %p1661_p4, %p1932_p7 }
  0x9f   : > { %p1670_p11 = por %p1669_p10, %p1668_p9 }
  0xa0   : > { %p1664_p8 = pneg %p1663_p6 }
  0xa2   : > { %p1671_p12 = pnand %p1670_p11, %p1664_p8 }
  0xa4   : > { %1674 = shalt.err (!%p1671_p12)
}
  0xa5   : > { %1420 = dma.hbm_to_vmem [thread:$0]  (!%p1916_p5), %s2235_s10, 16, %s494_s16, [#allocation11]  }
  0xa6   : > { %s1675_s15 = scalar_lea.hbm %s2236_s11, 32 }
  0xa7   : > { %p1676_p1 = scmp.ne.s32.totalorder %s2236_s11, %s1675_s15  ;;  %p1682_p0 = scmp.lt.u32.totalorder %s1675_s15, %s2236_s11 }
  0xa9   : > { %p1678_p3 = pnand %p1676_p1, %p1932_p7 }
  0xab   : > { %p1679_p13 = pneg %p1678_p3 }
  0xad   : > { %p1684_p2 = pnand %p1682_p0, %p1679_p13 }
  0xaf   : > { %1687 = shalt.err (!%p1684_p2)
}
  0xb0   : > { %s1688_s23 = scalar_lea.vmem %s505_s29, 32  ;;  %p1696_p9 = scmp.lt.s32.totalorder %s505_s29, %s505_s29 }
  0xb1   : > { %p1689_p4 = scmp.ne.s32.totalorder %s505_s29, %s1688_s23  ;;  %p1697_p10 = scmp.lt.s32.totalorder %s1688_s23, %s1688_s23 }
  0xb3   : > { %p1691_p6 = pnand %p1689_p4, %p1932_p7  ;;  %p1698_p11 = por %p1697_p10, %p1696_p9 }
  0xb5   : > { %p1692_p8 = pneg %p1691_p6 }
  0xb7   : > { %p1699_p12 = pnand %p1698_p11, %p1692_p8 }
  0xb9   : > { %1702 = shalt.err (!%p1699_p12)
}
  0xba   : > { %1423 = dma.hbm_to_vmem [thread:$0]  (!%p1916_p5), %s2236_s11, 32, %s505_s29, [#allocation14]  }
  0xbb   : > { %s2082_s26 = sadd.s32 1, %s1783_s21   ;;  %s118_s30 = sadd.s32 1, %s1779_s20 }
  0xbc   : > { %s115_s28 = ssub.s32 %s1783_s21, %s2082_s26  ;;  %p125_p1 = scmp.ne.s32.totalorder %s1779_s20, %s1775_s19 }
  0xbd   : > { %p116_p7 = scmp.eq.s32.totalorder %s115_s28, 0  ;;  %p126_p3 = scmp.eq.s32.totalorder %s1783_s21, 0 }
  0xbe   : > { %p131_p13 = scmp.ne.s32.totalorder %s1775_s19, %s1771_s18  ;;  %p2259_p2 = scmp.eq.s32.totalorder %s1901_s24, 0 }
  0xbf   : > { %s2093_s17 = scalar_select %p116_p7, %s1779_s20, %s118_s30  }
  0xc0   : > { %p127_p0 = por %p126_p3, %p125_p1  ;;  %p2097_p4 = por %p2259_p2, %p131_p13 }
  0xc1   : > { %p1435_p6 = scmp.lt.s32.totalorder %s1783_s21, 2  ;;  %s536_s13 = sand.u32 1, %s1779_s20  }
  0xc2   : > { %s1291_s29 = sshll.u32 %s536_s13, 3  ;;  %s1292_s2 = sshll.u32 %s1783_s21, 7 }
  0xc3   : > { %s2107_s15 = scalar_lea.hbm %s2228_s3, %s1292_s2  ;;  %s540_s18 = scalar_lea.vmem [#allocation2], %s1291_s29 }
  0xc4   : > { %s547_s8 = sshll.u32 %s540_s18, 4  ;;  %p2111_p5 = pnand %p1435_p6, %p127_p0  ;;  %s2109_s8 = int_to_ptr.vmem [resolvable:$true] %s547_s8 }
  0xc5   : > { %s537_s21 = scalar_lea.sflag [#allocation3], %s536_s13  ;;  %s1703_s14 = scalar_lea.hbm %s2107_s15, 128 }
  0xc6   : > { %p1704_p8 = scmp.ne.s32.totalorder %s2107_s15, %s1703_s14  ;;  %p1705_p9 = pneg %p2111_p5 }
  0xc7   : > { %s1708_s16 = scalar_lea.hbm %s2228_s3, 256  ;;  %p1709_p12 = scmp.lt.u32.totalorder %s2107_s15, %s2228_s3 }
  0xc8   : > { %p1706_p10 = pnand %p1705_p9, %p1704_p8  ;;  %p1710_p7 = scmp.lt.u32.totalorder %s1708_s16, %s1703_s14 }
  0xc9   : > { %p1712_p3 = scmp.lt.u32.totalorder %s1703_s14, %s2107_s15 }
  0xca   : > { %p1707_p11 = pneg %p1706_p10  ;;  %p1711_p1 = por %p1710_p7, %p1709_p12 }
  0xcc   : > { %p1713_p13 = por %p1712_p3, %p1711_p1 }
  0xce   : > { %p1714_p0 = pnand %p1713_p13, %p1707_p11 }
  0xd0   : > { %1717 = shalt.err (!%p1714_p0)
}
  0xd1   : > { %s1718_s30 = scalar_lea.vmem %s2109_s8, 128  ;;  %s1796_s13 = smov [#allocation2]  }
  0xd2   : > { %p1719_p2 = scmp.ne.s32.totalorder %s2109_s8, %s1718_s30  ;;  %s1723_s29 = sshll.u32 %s1796_s13, 4  ;;  %s1724_s29 = int_to_ptr.vmem [resolvable:$false] %s1723_s29 }
  0xd3   : > { %s1725_s2 = scalar_lea.vmem %s1724_s29, 256  ;;  %p1726_p10 = scmp.lt.s32.totalorder %s2109_s8, %s1724_s29 }
  0xd4   : > { %p1721_p6 = pnand %p1719_p2, %p1705_p9  ;;  %p1727_p12 = scmp.lt.s32.totalorder %s1725_s2, %s1718_s30 }
  0xd6   : > { %p1722_p8 = pneg %p1721_p6  ;;  %p1728_p7 = por %p1727_p12, %p1726_p10 }
  0xd8   : > { %p1729_p1 = pnand %p1728_p7, %p1722_p8 }
  0xda   : > { %1732 = shalt.err (!%p1729_p1)
}
  0xdb   : > { %1427 = dma.hbm_to_vmem [thread:$0]  (!%p2111_p5), %s2107_s15, 128, %s2109_s8, %s537_s21  }
  0xdc   : > { %p2262_p11 = scmp.ne.s32.totalorder %s2253_s25, 0 }
  0xdd   : > { %s558_s4 = sand.u32 (!%p2262_p11), 1, %s1775_s19  }
  0xde   : > { %556 = sbr.rel (%p2262_p11) target bundleno = 487 (0x1e7), region = 68  ;;  %s2143_s5 = sshll.u32 (!%p2262_p11), %s558_s4, 3 }
  0xdf   : > { %s559_s18 = scalar_lea.sflag (!%p2262_p11), [#allocation3], %s558_s4  ;;  %s562_s14 = scalar_lea.vmem (!%p2262_p11), [#allocation2], %s2143_s5 }
  0xe5   : > { %1750 = dma.done.wait (%p2097_p4), %s559_s18, 128  }
  0xe6   : > { %1752 = vsyncadd (%p2097_p4), %s559_s18, 4294967168  ;;  %p2263_p9 = scmp.eq.s32.totalorder %s1901_s24, 0 }
  0xe8   : > { %1754 = dma.done.wait (%p2263_p9), [#allocation5], 512   ;;  %p2264_p5 = pmov %p2263_p9 }
  0xea   : > { %1756 = vsyncadd (%p2264_p5), [#allocation5], 4294966784  ;;  %p2265_p3 = pmov %p2264_p5 }
  0xec   : > { %1758 = dma.done.wait (%p2265_p3), [#allocation8], 1280   ;;  %p2266_p13 = pmov %p2265_p3 }
  0xed   : > { %p2267_p0 = pmov %p2265_p3 }
  0xee   : > { %1760 = vsyncadd (%p2266_p13), [#allocation8], 4294966016 }
  0xef   : > { %1762 = dma.done.wait (%p2267_p0), [#allocation11], 32   ;;  %p2268_p2 = pmov %p2267_p0 }
  0xf0   : > { %p2269_p4 = pmov %p2267_p0 }
  0xf1   : > { %1764 = vsyncadd (%p2268_p2), [#allocation11], 4294967264 }
  0xf2   : > { %1766 = dma.done.wait (%p2269_p4), [#allocation14], 32   ;;  %p2270_p6 = pmov %p2267_p0 }
  0xf3   : > { %p661_p8 = scmp.lt.s32.totalorder %s1901_s24, 1  ;;  %v1797_v0 = vmov 0.0   ;;  %vm1798_vm0 = vmmov 0   ;;  %v1489_v1 = vld [vmem:[#allocation6] sm:$0xff]   ;;  %v1490_v2 = vld [vmem:[#allocation6 + $0x8] sm:$0xff]   ;;  %v1491_v3 = vld [vmem:[#allocation4] sm:$0xff]   ;;  %v917_v29 = vlaneseq }
  0xf4   : > { %1768 = vsyncadd (%p2270_p6), [#allocation14], 4294967264  ;;  %1356 = vmatprep.subr.bf16.mxu1 %v1797_v0  ;;  %1348 = vmatprep.subr.bf16.mxu0 %v1797_v0  ;;  %v1494_v5 = vld [vmem:[#allocation9 + $0x4] ss:$8 sps:$4 sm:$0xff]   ;;  %s2271_s27 = sld [smem:[#allocation20_spill]]  ;;  %v1495_v7 = vld [vmem:[#allocation4 + $0x8] sm:$0xff]  }
  0xf5   : > { %1360 = vmatprep.mubr.msk.bf16.mxu1 %vm1798_vm0, %v1797_v0  ;;  %s2283_s24 = smov (!%p661_p8, %s1901_s24), 1  ;;  %1352 = vmatprep.mubr.msk.bf16.mxu0 %vm1798_vm0, %v1797_v0  ;;  %vm716_vm1 = vcmask 261120   ;;  %v1492_v8 = vld [vmem:[#allocation9] ss:$8 sps:$4 sm:$0xff]   ;;  %v1498_v9 = vld [vmem:[#allocation9 + $0x14] ss:$8 sps:$4 sm:$0xff]  }
  0xf6   : > { %s2173_s25 = sshll.u32 %s2283_s24, 3  ;;  %1357 = vmatpush3.bf16.msra.mxu1 %v1489_v1  ;;  %1349 = vmatpush3.bf16.msra.mxu0 %v1491_v3  ;;  %v1499_v12 = vld [vmem:[#allocation7] sm:$0xff]   ;;  %s2272_s28 = sld [smem:[#allocation21_spill]]  ;;  %v1799_v14 = vmov 0   ;;  %v1502_v15 = vld [vmem:[#allocation9 + $0x24] ss:$8 sps:$4 sm:$0xff]  }
  0xf7   : > { %s668_s8 = scalar_lea.vmem %s2226_s1, %s2173_s25  ;;  %1358 = vmatprep.subr.bf16.mxu1 %v1797_v0  ;;  %1350 = vmatprep.subr.bf16.mxu0 %v1797_v0  ;;  %v1496_v13 = vld [vmem:[#allocation9 + $0x10] ss:$8 sps:$4 sm:$0xff]   ;;  %v1500_v18 = vld [vmem:[#allocation9 + $0x20] ss:$8 sps:$4 sm:$0xff]   ;;  %v1506_v19 = vld [vmem:[#allocation9 + $0x34] ss:$8 sps:$4 sm:$0xff]  }
  0xf8   : > { %v763_v4 = vld [vmem:[%s668_s8] sm:$0xff]  ;;  %v1503_v16 = vld [vmem:[#allocation7 + $0x8] sm:$0xff]   ;;  %vm967_vm2 = vcmask 523264   ;;  %s2273_s2 = sld [smem:[#allocation24_spill]]  ;;  %s2274_s18 = sld [smem:[#allocation26_spill]]  ;;  %v918_v39 = vshrl.u32 %v917_v29, 7 }
  0xf9   : > { %v764_v6 = vpack.c.bf16 %v763_v4, %v763_v4  ;;  %v1504_v21 = vld [vmem:[#allocation9 + $0x30] ss:$8 sps:$4 sm:$0xff]   ;;  %v905_v22 = vld [vmem:[%s562_s14] sm:$0xff]  ;;  %s2275_s8 = sld [smem:[#allocation25_spill]]  ;;  %s1338_s0 = sshll.u32 %s2283_s24, 4 }
  0xfa   : > { %s664_s23 = scalar_lea.vmem %s2271_s27, %s2173_s25  ;;  %1359 = vmatpush3.bf16.msra.mxu1 %v1490_v2  ;;  %1351 = vmatpush3.bf16.msra.mxu0 %v1495_v7  ;;  %v906_v23 = vpack.c.bf16 %v905_v22, %v905_v22  ;;  %v1315_v24 = vld [vmem:[#allocation10] ss:$0 sm:$0xff]  ;;  %v1320_v40 = vld [vmem:[#allocation12] ss:$0 sm:$0xff]  ;;  %v919_v41 = vsub.s32 0, %v918_v39  ;;  %v923_v44 = vsub.s32 1, %v918_v39 }
  0xfb   : > { %971 = vmatprep.subr.bf16.mxu1 %v1494_v5  ;;  %v691_v10 = vld [vmem:[%s664_s23] sm:$0xff]  ;;  %1364 = vmatprep.subr.bf16.mxu0 %v1797_v0  ;;  %s2276_s23 = sld [smem:[#allocation27_spill]]  ;;  %s2277_s13 = sld [smem:[#allocation28_spill]] }
  0xfc   : > { %v692_v11 = vpack.c.bf16 %v691_v10, %v691_v10  ;;  %s672_s30 = scalar_lea.vmem %s2272_s28, %s2173_s25  ;;  %v915_v43 = vld [vmem:[#allocation13] sm:$0x3] }
  0xfd   : > { %1361 = vmatmul.mubr.msk.bf16.vlgmr.msra.gmra.mrb[0].mxu1 %vm716_vm1, %v764_v6  ;;  %v834_v17 = vld [vmem:[%s672_s30] sm:$0xff]  ;;  %v920_v49 = vrot.slane %v915_v43, %v919_v41  ;;  %v924_v51 = vrot.slane %v915_v43, %v923_v44 }
  0xfe   : > { %972 = vmatpush1.bf16.msra.mxu1 %v1492_v8  ;;  %1003 = vmatprep.mubr.bf16.mxu1 %v1799_v14  ;;  %v835_v20 = vpack.c.bf16 %v834_v17, %v834_v17  ;;  %v1310_v26 = vld [vmem:[%s2273_s2] ss:$0 sm:$0xff]  ;;  %s680_s14 = scalar_lea.vmem %s2274_s18, %s2173_s25 }
  0xff   : > { %973 = vmatprep.subr.bf16.mxu1 %v1498_v9  ;;  %1353 = vmatmul.mubr.msk.bf16.vlgmr.msra.gmra.mrb[0].mxu0 %vm716_vm1, %v692_v11  ;;  %s676_s22 = scalar_lea.vmem %s2275_s8, %s2173_s25 }
 0x100   : > { %1365 = vmatpush3.bf16.msra.mxu0 %v1499_v12  ;;  %1368 = vmatprep.mubr.msk.bf16.mxu0 %vm1798_vm0, %v1797_v0 }
 0x101   : > { %1366 = vmatprep.subr.bf16.mxu0 %v1797_v0  ;;  %s684_s16 = scalar_lea.vmem %s2276_s23, %s2173_s25  ;;  %s689_s29 = scalar_lea.vmem %s2277_s13, %s1338_s0 }
 0x102   : > { %974 = vmatpush1.bf16.msra.mxu1 %v1496_v13 }
 0x103   : > { %975 = vmatprep.subr.bf16.mxu1 %v1502_v15 }
 0x104   : > { %1367 = vmatpush3.bf16.msra.mxu0 %v1503_v16 }
 0x106   : > { %976 = vmatpush1.bf16.msra.mxu1 %v1500_v18 }
 0x107   : > { %977 = vmatprep.subr.bf16.mxu1 %v1506_v19  ;;  %1369 = vmatmul.mubr.msk.bf16.vlgmr.msra.gmra.mrb[4].mxu0 %vm716_vm1, %v835_v20 }
 0x10a   : > { %978 = vmatpush1.bf16.msra.mxu1 %v1504_v21 }
 0x10d   : > { %1333 = vmatmul.mubr.msk.bf16.vlgmr.msra.gmra.mrb[4].mxu1 %vm967_vm2, %v906_v23 }
 0x1d0   : > { %v825_v25 = vpop.f32.mrb[0].mxu1 }
 0x1d1   : > { %v826_v27 = vadd.f32 %v1315_v24, %v825_v25  ;;  %v1362_v28 = vpop.f32.mrb[1].mxu1 }
 0x1d2   : > { %v828_v30 = vpop.f32.mrb[2].mxu1  ;;  %v754_v31 = vpop.f32.mrb[0].mxu0 }
 0x1d3   : > { %v1319_v32 = vclamps-f32 %v826_v27, 50.0  ;;  %v1363_v33 = vpop.f32.mrb[3].mxu1  ;;  %v755_v34 = vadd.f32 %v1310_v26, %v754_v31  ;;  %v1354_v35 = vpop.f32.mrb[1].mxu0 }
 0x1d4   : > { %v757_v36 = vpop.f32.mrb[2].mxu0 }
 0x1d5   : > { %833 = vst [vmem:[%s680_s14] sm:$0xff] %v1319_v32  ;;  %v1314_v37 = vclamps-f32 %v755_v34, 50.0  ;;  %v1355_v38 = vpop.f32.mrb[3].mxu0 }
 0x1d7   : > { %762 = vst [vmem:[%s676_s22] sm:$0xff] %v1314_v37 }
 0x1da   : > { %v896_v42 = vpop.f32.mrb[4].mxu0 }
 0x1db   : > { %v897_v45 = vadd.f32 %v1320_v40, %v896_v42  ;;  %v1370_v46 = vpop.f32.mrb[5].mxu0 }
 0x1dc   : > { %v899_v47 = vpop.f32.mrb[6].mxu0 }
 0x1dd   : > { %v1324_v48 = vclamps-f32 %v897_v45, 50.0  ;;  %v1371_v50 = vpop.f32.mrb[7].mxu0 }
 0x1df   : > { %904 = vst [vmem:[%s684_s16] sm:$0xff] %v1324_v48 }
 0x1e0   : > { %v1005_v52 = vpop.f32.mrb[4].mxu1 }
 0x1e1   : > { %v1006_v53 = vadd.f32 %v1005_v52, %v920_v49  ;;  %v1007_v54 = vpop.f32.mrb[5].mxu1 }
 0x1e2   : > { %v1008_v55 = vadd.f32 %v1007_v54, %v924_v51  ;;  %v1009_v56 = vpop.f32.mrb[6].mxu1 }
 0x1e3   : > { %v1334_v57 = vclamps-f32 %v1006_v53, 50.0  ;;  %v1010_v58 = vpop.f32.mrb[7].mxu1 }
 0x1e4   : > { %v1335_v59 = vclamps-f32 %v1008_v55, 50.0 }
 0x1e5   : > { %1016 = vst [vmem:[%s689_s29] sm:$0xff] %v1334_v57 }
 0x1e6   : > { %1017 = vst [vmem:[%s689_s29 + $0x8] sm:$0xff] %v1335_v59 }
 0x1e7 PF: > { %p30_p10 = scmp.ge.s32.totalorder %s2082_s26, 4   ;;  %s2278_s18 = smov %s1775_s19 }
 0x1e8   : > { %s2279_s19 = smov %s1779_s20  ;;  %s2280_s20 = smov %s2093_s17 }
 0x1e9   : > { %s2281_s21 = smov %s2082_s26  ;;  %32 = sbr.rel (!%p30_p10) target bundleno = 17 (0x11), region = 181 }
 0x1f0   :  { %1081 = vsyncpa [#allocation3], 1 }
 0x1f1   :  { %1083 = vsyncpa [#allocation3 + $0x1], 1 }
 0x1f2   :  { %1084 = vsyncpa [#allocation5], 1 }
 0x1f3   :  { %1085 = vsyncpa [#allocation8], 1 }
 0x1f4   :  { %1086 = vsyncpa [#allocation11], 1 }
 0x1f5   :  { %1087 = vsyncpa [#allocation14], 1 }

</bundles_post_ra>
